<compile_context>
chip_gen: v7x
topology: tpu7x:2x2x1
jax: 0.10.0
libtpu: 0.0.40
codegen_flags: <defaults>
</compile_context>

<pallas_src>
import functools

import jax
import jax.numpy as jnp
from jax.experimental import pallas as pl
from jax.experimental.pallas import tpu as pltpu


def _round_up(n: int, m: int) -> int:
    return ((n + m - 1) // m) * m


def _cdiv(a: int, b: int) -> int:
    return (a + b - 1) // b


def _linear_kernel(x_ref, w_ref, b_ref, o_ref):
    # x_ref: (TB, Dp)   w_ref: (Dp, TN)  [K on sublanes, N on lanes]   b_ref: (1, TN)
    # Canonical [M,K] x [K,N] contraction -> straight MXU push, no in-loop transpose.
    acc = jax.lax.dot_general(
        x_ref[...], w_ref[...],
        dimension_numbers=(((1,), (0,)), ((), ())),
        preferred_element_type=jnp.float32,
    )
    o_ref[...] = (acc + b_ref[...].astype(jnp.float32)).astype(o_ref.dtype)


@functools.partial(jax.jit, static_argnames=("batch_tile", "compute_dtype"))
def classifier_forward(x, w, b, *, batch_tile: int = 1024, compute_dtype=None):
    """Pallas equivalent of ClassifierNetwork.forward (single nn.Linear)."""
    batch, input_size = x.shape
    num_classes = w.shape[0]
    out_dtype = x.dtype

    x_cdt = compute_dtype if compute_dtype is not None else x.dtype
    w_cdt = compute_dtype if compute_dtype is not None else w.dtype
    x_elt = jnp.dtype(x_cdt).itemsize
    w_elt = jnp.dtype(w_cdt).itemsize
    o_elt = jnp.dtype(out_dtype).itemsize

    # --- lane-dense (128-aligned) K / N extents --------------------------------
    d_pad = _round_up(input_size, 128)
    c_pad = _round_up(num_classes, 128)

    # --- generation-aware VMEM budget + explicit scoped limit -------------------
    try:
        phys_vmem = int(getattr(pltpu.get_tpu_info(), "vmem_capacity_bytes", 128 << 20))
    except Exception:  # pragma: no cover - conservative fallback
        phys_vmem = 128 << 20
    budget = (phys_vmem * 3) // 4                    # ~96 MiB v5e/v6e, ~48 MiB v7x
    vmem_limit = int(min(phys_vmem - (4 << 20), budget + (8 << 20)))

    # --- class (N) tile: split only if the resident weight is too large ---------
    tn = c_pad
    if d_pad * c_pad * w_elt > budget // 2:
        while tn > 128 and 2 * d_pad * tn * w_elt > budget // 3:
            tn = max(128, _round_up(tn // 2, 128))
    grid_n = _cdiv(c_pad, tn)
    w_bufs = 1 if grid_n == 1 else 2                 # Buffered(1) only if grid-constant

    # --- batch (M) tile ----------------------------------------------------------
    if batch <= 8:
        tb = batch                                   # single full-dim block
    else:
        tb = min(batch_tile, _round_up(batch, 8))
        if batch >= 32:                              # >= ~4 grid steps: megacore + pipeline
            tb = min(tb, max(8, _round_up(_cdiv(batch, 4), 8)))
        tb = max(8, (tb // 8) * 8)

    def vmem_bytes(t, n):
        return (2 * t * d_pad * x_elt                # x, double-buffered
                + w_bufs * d_pad * n * w_elt         # weights
                + w_bufs * n * 4                     # bias
                + 2 * t * n * o_elt)                 # output, double-buffered

    while tb > 8 and vmem_bytes(tb, tn) > budget:
        tb = max(8, _round_up(tb // 2, 8))
    grid_b = _cdiv(batch, tb)                        # remainder handled by masked block

    # --- operands: pad / cast only when actually needed --------------------------
    if d_pad != input_size:
        xp = jnp.zeros((batch, d_pad), x_cdt).at[:, :input_size].set(x.astype(x_cdt))
    elif x.dtype != jnp.dtype(x_cdt):
        xp = x.astype(x_cdt)
    else:
        xp = x

    wt = w.T.astype(w_cdt)                           # one-time transpose to [K, N]
    if d_pad != input_size or c_pad != num_classes:
        wp = jnp.zeros((d_pad, c_pad), w_cdt).at[:input_size, :num_classes].set(wt)
    else:
        wp = wt

    if c_pad != num_classes:
        bp = jnp.zeros((1, c_pad), b.dtype).at[0, :num_classes].set(b.reshape(-1))
    else:
        bp = b.reshape(1, num_classes)

    # --- specs -------------------------------------------------------------------
    if grid_n == 1 and hasattr(pl, "Buffered"):
        w_spec = pl.BlockSpec((d_pad, tn), lambda i, j: (0, j),
                              pipeline_mode=pl.Buffered(1))
        b_spec = pl.BlockSpec((1, tn), lambda i, j: (0, j),
                              pipeline_mode=pl.Buffered(1))
    else:
        w_spec = pl.BlockSpec((d_pad, tn), lambda i, j: (0, j))
        b_spec = pl.BlockSpec((1, tn), lambda i, j: (0, j))

    cost = pl.CostEstimate(
        flops=2 * batch * input_size * num_classes,
        transcendentals=0,
        bytes_accessed=(batch * input_size * x_elt
                        + input_size * num_classes * w_elt
                        + num_classes * 4
                        + batch * num_classes * o_elt),
    )

    out_padded = pl.pallas_call(
        _linear_kernel,
        out_shape=jax.ShapeDtypeStruct((batch, c_pad), out_dtype),
        grid=(grid_b, grid_n),
        in_specs=[
            pl.BlockSpec((tb, d_pad), lambda i, j: (i, 0)),   # x tile over batch
            w_spec,                                           # W (resident or N-tiled)
            b_spec,                                           # bias
        ],
        out_specs=pl.BlockSpec((tb, tn), lambda i, j: (i, j)),
        compiler_params=pltpu.CompilerParams(
            dimension_semantics=("parallel", "parallel"),
            vmem_limit_bytes=vmem_limit,
        ),
        cost_estimate=cost,
    )(xp, wp, bp)

    if c_pad != num_classes:
        return out_padded[:, :num_classes]
    return out_padded


if __name__ == "__main__":
    # Small shapes consistent with ClassifierNetwork(input_size=32, num_classes=16).
    batch = 8
    input_size = 32
    num_classes = 16

    key = jax.random.PRNGKey(0)
    kx, kw, kb = jax.random.split(key, 3)

    bound = 1.0 / (input_size ** 0.5)
    x = jax.random.normal(kx, (batch, input_size), dtype=jnp.float32)
    w = jax.random.uniform(kw, (num_classes, input_size),
                           minval=-bound, maxval=bound, dtype=jnp.float32)
    b = jax.random.uniform(kb, (num_classes,),
                           minval=-bound, maxval=bound, dtype=jnp.float32)

    out = classifier_forward(x, w, b)
    out = jax.block_until_ready(out)

    # Correctness check against plain-JAX reference of nn.Linear semantics.
    ref = x @ w.T + b
    assert out.shape == (batch, num_classes)
    assert jnp.allclose(out, ref, atol=1e-5, rtol=1e-5), "mismatch vs reference"

    print("KERNEL_OK")
</pallas_src>

<mosaic_0001>
module attributes {stable_mosaic.version = 11 : i64} {
  func.func @_linear_kernel(%arg0: i32, %arg1: i32, %arg2: memref<8x128xf32, #tpu.memory_space<vmem>>, %arg3: memref<128x128xf32, #tpu.memory_space<vmem>>, %arg4: memref<1x128xf32, #tpu.memory_space<vmem>>, %arg5: memref<8x128xf32, #tpu.memory_space<vmem>>) attributes {dimension_semantics = [#tpu.dimension_semantics<parallel>, #tpu.dimension_semantics<parallel>], iteration_bounds = array<i64: 1, 1>, scalar_prefetch = 0 : i64, scratch_operands = 0 : i64, tpu.core_type = #tpu.core_type<tc>, window_params = [{transform_indices = @transform_0, window_bounds = array<i64: 8, 128>}, {pipeline_mode = #tpu.pipeline_mode<synchronous>, transform_indices = @transform_1, window_bounds = array<i64: 128, 128>}, {pipeline_mode = #tpu.pipeline_mode<synchronous>, transform_indices = @transform_2, window_bounds = array<i64: 1, 128>}, {transform_indices = @transform_3, window_bounds = array<i64: 8, 128>}]} {
    %c0 = arith.constant 0 : index
    %c0_0 = arith.constant 0 : index
    %0 = vector.load %arg2[%c0, %c0_0] : memref<8x128xf32, #tpu.memory_space<vmem>>, vector<8x128xf32>
    %c0_1 = arith.constant 0 : index
    %c0_2 = arith.constant 0 : index
    %1 = vector.load %arg3[%c0_1, %c0_2] : memref<128x128xf32, #tpu.memory_space<vmem>>, vector<128x128xf32>
    %cst = arith.constant dense<0.000000e+00> : vector<8x128xf32>
    %2 = tpu.matmul %0, %1, %cst {dimension_numbers = #tpu.dot_dimension_numbers<[1], [0], [0], [1], [0, 0, 1, 1], [], []>} : vector<8x128xf32>, vector<128x128xf32>, vector<8x128xf32> -> vector<8x128xf32>
    %c0_3 = arith.constant 0 : index
    %c0_4 = arith.constant 0 : index
    %3 = vector.load %arg4[%c0_3, %c0_4] : memref<1x128xf32, #tpu.memory_space<vmem>>, vector<1x128xf32>
    %4 = vector.broadcast %3 : vector<1x128xf32> to vector<8x128xf32>
    %5 = arith.addf %2, %4 : vector<8x128xf32>
    %c0_5 = arith.constant 0 : index
    %c0_6 = arith.constant 0 : index
    %6 = vector.load %arg5[%c0_5, %c0_6] : memref<8x128xf32, #tpu.memory_space<vmem>>, vector<8x128xf32>
    tpu.vector_store %arg5[%c0_5, %c0_6], %5 {strides = array<i32>} : memref<8x128xf32, #tpu.memory_space<vmem>>, vector<8x128xf32>,
    return
  }
  func.func @transform_0(%arg0: i32, %arg1: i32) -> (i32, i32) {
    %c0_i32 = arith.constant 0 : i32
    %c0_i32_0 = arith.constant 0 : i32
    return %arg0, %c0_i32 : i32, i32
  }
  func.func @transform_1(%arg0: i32, %arg1: i32) -> (i32, i32) {
    %c0_i32 = arith.constant 0 : i32
    %c0_i32_0 = arith.constant 0 : i32
    return %c0_i32, %arg1 : i32, i32
  }
  func.func @transform_2(%arg0: i32, %arg1: i32) -> (i32, i32) {
    %c0_i32 = arith.constant 0 : i32
    %c0_i32_0 = arith.constant 0 : i32
    return %c0_i32, %arg1 : i32, i32
  }
  func.func @transform_3(%arg0: i32, %arg1: i32) -> (i32, i32) {
    %c0_i32 = arith.constant 0 : i32
    return %arg0, %arg1 : i32, i32
  }
}

</mosaic_0001>

<bundles_post_ra>
// kernel: classifier_forward.1
= control target key start
LH: loop header
LB: loop body
LE: loop exit
PB: predicated region body
PF: predicated region fallthrough
CT: control target
= control target key end

     0   :  { %8 = vsyncpa [#allocation3], 0  ;;  %s420_s0 = inlined_call_operand.hbm [shape: f32[8,128], index: 0, kind: input, shape index: {}]   ;;  %s421_s1 = inlined_call_operand.hbm [shape: f32[128,128], index: 1, kind: input, shape index: {}]   ;;  %s422_s2 = inlined_call_operand.hbm [shape: f32[1,128], index: 2, kind: input, shape index: {}]   ;;  %s423_s3 = inlined_call_operand.hbm [shape: f32[8,128], index: 3, kind: output, shape index: {}]  }
   0x1   :  { %9 = vsyncpa [#allocation6], 0 }
   0x2   :  { %10 = vsyncpa [#allocation4], 0  ;;  %s343_s12 = smov [#allocation5]   ;;  %s249_s16 = scalar_lea.hbm %s421_s1, 2048 }
   0x3   :  { %s26_s13 = sshll.u32 %s343_s12, 4  ;;  %p250_p0 = scmp.ne.s32.totalorder %s421_s1, %s249_s16  ;;  %s27_s13 = int_to_ptr.vmem [resolvable:$true] %s26_s13 }
   0x4   :  { %p253_p1 = scmp.lt.u32.totalorder %s249_s16, %s421_s1 }
   0x6   :  { %p255_p2 = pnand %p253_p1, %p250_p0 }
   0x8   :  { %258 = shalt.err (!%p255_p2)
}
   0x9   :  { %s259_s21 = scalar_lea.vmem %s27_s13, 2048  ;;  %p264_p4 = scmp.lt.s32.totalorder %s27_s13, %s27_s13 }
   0xa   :  { %p260_p3 = scmp.ne.s32.totalorder %s27_s13, %s259_s21  ;;  %p265_p5 = scmp.lt.s32.totalorder %s259_s21, %s259_s21 }
   0xc   :  { %p266_p6 = por %p265_p5, %p264_p4 }
   0xe   :  { %p267_p7 = pnand %p266_p6, %p260_p3 }
  0x10   :  { %270 = shalt.err (!%p267_p7)
}
  0x11   :  { %s344_s22 = smov 128   ;;  %s345_s23 = smov 8  }
  0x12   :  { %32 = dma.hbm_to_vmem [thread:$0]  %s421_s1, 2048, %s27_s13, [#allocation6], %s344_s22, %s344_s22, %s345_s23  }
  0x13   :  { %s346_s26 = smov [#allocation2]   ;;  %s347_s28 = smov [#allocation7]  }
  0x14   :  { %s17_s27 = sshll.u32 %s346_s26, 4  ;;  %s39_s29 = sshll.u32 %s347_s28, 4  ;;  %s18_s27 = int_to_ptr.vmem [resolvable:$true] %s17_s27  ;;  %s40_s29 = int_to_ptr.vmem [resolvable:$true] %s39_s29 }
  0x15   :  { %s271_s5 = scalar_lea.hbm %s420_s0, 128 }
  0x16   :  { %p272_p8 = scmp.ne.s32.totalorder %s420_s0, %s271_s5  ;;  %p275_p9 = scmp.lt.u32.totalorder %s271_s5, %s420_s0 }
  0x18   :  { %p277_p10 = pnand %p275_p9, %p272_p8 }
  0x1a   :  { %280 = shalt.err (!%p277_p10)
}
  0x1b   :  { %s281_s1 = scalar_lea.vmem %s18_s27, 128  ;;  %p286_p12 = scmp.lt.s32.totalorder %s18_s27, %s18_s27 }
  0x1c   :  { %p282_p11 = scmp.ne.s32.totalorder %s18_s27, %s281_s1  ;;  %p287_p13 = scmp.lt.s32.totalorder %s281_s1, %s281_s1 }
  0x1e   :  { %p288_p0 = por %p287_p13, %p286_p12 }
  0x20   :  { %p289_p1 = pnand %p288_p0, %p282_p11 }
  0x22   :  { %292 = shalt.err (!%p289_p1)
}
  0x23   :  { %20 = dma.hbm_to_vmem [thread:$0]  %s420_s0, 128, %s18_s27, [#allocation3]  }
  0x24   :  { %s293_s14 = scalar_lea.hbm %s422_s2, 16 }
  0x25   :  { %p294_p2 = scmp.ne.s32.totalorder %s422_s2, %s293_s14  ;;  %p297_p3 = scmp.lt.u32.totalorder %s293_s14, %s422_s2 }
  0x27   :  { %p299_p4 = pnand %p297_p3, %p294_p2 }
  0x29   :  { %302 = shalt.err (!%p299_p4)
}
  0x2a   :  { %s303_s19 = scalar_lea.vmem %s40_s29, 16  ;;  %s307_s20 = scalar_lea.vmem %s40_s29, 32 }
  0x2b   :  { %p304_p5 = scmp.ne.s32.totalorder %s40_s29, %s303_s19  ;;  %p308_p6 = scmp.lt.s32.totalorder %s40_s29, %s40_s29 }
  0x2c   :  { %p309_p7 = scmp.lt.s32.totalorder %s307_s20, %s303_s19 }
  0x2e   :  { %p310_p8 = por %p309_p7, %p308_p6 }
  0x30   :  { %p311_p9 = pnand %p310_p8, %p304_p5 }
  0x32   :  { %314 = shalt.err (!%p311_p9)
}
  0x33   :  { %42 = dma.hbm_to_vmem [thread:$0]  %s422_s2, 16, %s40_s29, [#allocation6]  }
  0x34   :  { %337 = dma.done.wait [#allocation3], 128  }
  0x35   :  { %338 = vsyncadd [#allocation3], 4294967168 }
  0x36   :  { %339 = dma.done.wait [#allocation6], 2064  }
  0x37   :  { %340 = vsyncadd [#allocation6], 4294965232  ;;  %v348_v0 = vmov 0.0|0.0   ;;  %vm349_vm0 = vmmov 0   ;;  %v350_v1 = vmov 0.0   ;;  %v53_v2 = vld [vmem:[#allocation5] sm:$0xff] }
  0x38   :  { %216 = vmatprep.subr.bf16.mxu0 %v348_v0  ;;  %213 = vmatprep.mubr.msk.f32.mxu0 %vm349_vm0, %v350_v1  ;;  %v54_v3 = vld [vmem:[#allocation5 + $0x8] sm:$0xff]  ;;  %v55_v4 = vld [vmem:[#allocation5 + $0x10] sm:$0xff]  ;;  %v56_v6 = vld [vmem:[#allocation5 + $0x18] sm:$0xff]  ;;  %s351_s2 = smov [#allocation8]  }
  0x39   :  { %v217_v5 = vpack.c.bf16 %v54_v3, %v53_v2  ;;  %v220_v7 = vpack.c.bf16 %v56_v6, %v55_v4  ;;  %v57_v8 = vld [vmem:[#allocation5 + $0x20] sm:$0xff]  ;;  %v58_v9 = vld [vmem:[#allocation5 + $0x28] sm:$0xff]  ;;  %v59_v11 = vld [vmem:[#allocation5 + $0x30] sm:$0xff]  ;;  %s153_s22 = sshll.u32 %s351_s2, 4  ;;  %s154_s22 = int_to_ptr.vmem [resolvable:$true] %s153_s22 }
  0x3a   :  { %v223_v10 = vpack.c.bf16 %v58_v9, %v57_v8  ;;  %v60_v12 = vld [vmem:[#allocation5 + $0x38] sm:$0xff]  ;;  %v61_v14 = vld [vmem:[#allocation5 + $0x40] sm:$0xff]  ;;  %v62_v15 = vld [vmem:[#allocation5 + $0x48] sm:$0xff]  ;;  %s315_s23 = scalar_lea.vmem %s154_s22, 128  ;;  %p320_p11 = scmp.lt.s32.totalorder %s154_s22, %s154_s22 }
  0x3b   :  { %218 = vmatpush3.bf16.msra.mxu0 %v217_v5  ;;  %v226_v13 = vpack.c.bf16 %v60_v12, %v59_v11  ;;  %v229_v16 = vpack.c.bf16 %v62_v15, %v61_v14  ;;  %v63_v17 = vld [vmem:[#allocation5 + $0x50] sm:$0xff]  ;;  %v64_v18 = vld [vmem:[#allocation5 + $0x58] sm:$0xff]  ;;  %v65_v20 = vld [vmem:[#allocation5 + $0x60] sm:$0xff]  ;;  %p316_p10 = scmp.ne.s32.totalorder %s154_s22, %s315_s23  ;;  %p321_p12 = scmp.lt.s32.totalorder %s315_s23, %s315_s23 }
  0x3c   :  { %219 = vmatprep.subr.bf16.mxu0 %v348_v0  ;;  %v232_v19 = vpack.c.bf16 %v64_v18, %v63_v17  ;;  %v66_v21 = vld [vmem:[#allocation5 + $0x68] sm:$0xff]  ;;  %v67_v23 = vld [vmem:[#allocation5 + $0x70] sm:$0xff]  ;;  %v68_v24 = vld [vmem:[#allocation5 + $0x78] sm:$0xff] }
  0x3d   :  { %v235_v22 = vpack.c.bf16 %v66_v21, %v65_v20  ;;  %v238_v25 = vpack.c.bf16 %v68_v24, %v67_v23  ;;  %v52_v26 = vld [vmem:[#allocation2] sm:$0xff]  ;;  %v163_v27 = vld [vmem:[#allocation7] ss:$0 sm:$0xff]  ;;  %p322_p13 = por %p321_p12, %p320_p11 }
  0x3f   :  { %221 = vmatpush3.bf16.msra.mxu0 %v220_v7  ;;  %p323_p0 = pnand %p322_p13, %p316_p10 }
  0x40   :  { %222 = vmatprep.subr.bf16.mxu0 %v348_v0 }
  0x43   :  { %224 = vmatpush3.bf16.msra.mxu0 %v223_v10 }
  0x44   :  { %225 = vmatprep.subr.bf16.mxu0 %v348_v0 }
  0x47   :  { %227 = vmatpush3.bf16.msra.mxu0 %v226_v13 }
  0x48   :  { %228 = vmatprep.subr.bf16.mxu0 %v348_v0 }
  0x4b   :  { %230 = vmatpush3.bf16.msra.mxu0 %v229_v16 }
  0x4c   :  { %231 = vmatprep.subr.bf16.mxu0 %v348_v0 }
  0x4f   :  { %233 = vmatpush3.bf16.msra.mxu0 %v232_v19 }
  0x50   :  { %234 = vmatprep.subr.bf16.mxu0 %v348_v0 }
  0x53   :  { %236 = vmatpush3.bf16.msra.mxu0 %v235_v22 }
  0x54   :  { %237 = vmatprep.subr.bf16.mxu0 %v348_v0 }
  0x57   :  { %239 = vmatpush3.bf16.msra.mxu0 %v238_v25 }
  0x5a   :  { %214 = vmatmul.mubr.f32.vlgmr.msra.gmra.mrb[0].mxu0 %v52_v26 }
 0x12d   :  { %v142_v28 = vpop.f32.mrb[0].mxu0 }
 0x12e   :  { %v143_v29 = vadd.f32 %v163_v27, %v142_v28  ;;  %v215_v30 = vpop.f32.mrb[1].mxu0 }
 0x130   :  { %146 = vst [vmem:[#allocation8] sm:$0xff] %v143_v29 }
 0x131   :  { %326 = shalt.err (!%p323_p0)
}
 0x132   :  { %s327_s26 = scalar_lea.hbm %s423_s3, 128 }
 0x133   :  { %p328_p1 = scmp.ne.s32.totalorder %s423_s3, %s327_s26  ;;  %p331_p2 = scmp.lt.u32.totalorder %s327_s26, %s423_s3 }
 0x135   :  { %p333_p3 = pnand %p331_p2, %p328_p1 }
 0x137   :  { %336 = shalt.err (!%p333_p3)
}
 0x138   :  { %156 = dma.vmem_to_hbm [thread:$0]  %s154_s22, 128, %s423_s3, [#allocation4]  }
 0x139   :  { %341 = dma.done.wait [#allocation4], 128  }
 0x13a   :  { %342 = vsyncadd [#allocation4], 4294967168 }
 0x13b   :  { %160 = vsyncpa [#allocation3], 1 }
 0x13c   :  { %161 = vsyncpa [#allocation6], 1 }
 0x13d   :  { %162 = vsyncpa [#allocation4], 1 }

</bundles_post_ra>
